<compile_context>
chip_gen: v7x
topology: tpu7x:2x2x1
jax: 0.10.0
libtpu: 0.0.40
codegen_flags: <defaults>
</compile_context>

<pallas_src>
import functools

import jax
import jax.numpy as jnp
from jax.experimental import pallas as pl
from jax.experimental.pallas import tpu as pltpu


def _round_up(x, m):
    return ((x + m - 1) // m) * m


# ---------------------------------------------------------------------------
# Kernels (specialized per get_emb branch; each writes only what it needs).
# ---------------------------------------------------------------------------
def _logits_kernel(x_ref, w0_ref, b0_ref, w1_ref, b1_ref, out_ref):
    # layer0: Linear + ReLU (MXU matmul, f32 accumulation)
    h = jnp.dot(x_ref[...], w0_ref[...], preferred_element_type=jnp.float32)
    h = jnp.maximum(h + b0_ref[...], 0.0)                     # (TB, Hp)
    # layer1: Linear (emb fed in the weight dtype, matching module semantics)
    o = jnp.dot(h.astype(w1_ref.dtype), w1_ref[...],
                preferred_element_type=jnp.float32)
    out_ref[...] = (o + b1_ref[...]).astype(out_ref.dtype)    # (TB, Cp)


def _emb_kernel(x_ref, w0_ref, b0_ref, emb_ref):
    h = jnp.dot(x_ref[...], w0_ref[...], preferred_element_type=jnp.float32)
    emb_ref[...] = jnp.maximum(h + b0_ref[...], 0.0).astype(emb_ref.dtype)


# ---------------------------------------------------------------------------
# Wrapper
# ---------------------------------------------------------------------------
def my_mlps_forward(x, w0, b0, w1, b1, get_emb=False, *, batch_tile=512):
    """x: (B, dim_in); w0: (dim_in, dim_hid); b0: (dim_hid,) or (1, dim_hid);
       w1: (dim_hid, n_classes); b1: (n_classes,) or (1, n_classes)."""
    B, dim_in = x.shape
    dim_hid = w0.shape[1]
    n_classes = w1.shape[1]

    # Biases may arrive 1-D (PyTorch style); keep them 2-D for TPU lane layout.
    b0 = b0.reshape(1, dim_hid)
    b1 = b1.reshape(1, n_classes)

    # Lane-dense padding of the feature (lane) dims to multiples of 128.
    Hp = _round_up(dim_hid, 128)
    Cp = _round_up(n_classes, 128)

    # Batch tile: multiple of 8 sublanes, capped so tiles fit comfortably in
    # VMEM even on v7x (64 MiB physical / 32 MiB default scoped).
    TB = min(batch_tile, _round_up(B, 8))
    Bp = _round_up(B, TB)
    nb = Bp // TB

    # Zero-pad operands (zero hidden columns stay zero through ReLU and the
    # zero rows of w1 make them inert; padded class columns are sliced off).
    xp = x if Bp == B else jnp.pad(x, ((0, Bp - B), (0, 0)))
    w0p = w0 if Hp == dim_hid else jnp.pad(w0, ((0, 0), (0, Hp - dim_hid)))
    b0p = b0 if Hp == dim_hid else jnp.pad(b0, ((0, 0), (0, Hp - dim_hid)))
    w1p = w1
    if Hp != dim_hid or Cp != n_classes:
        w1p = jnp.pad(w1, ((0, Hp - dim_hid), (0, Cp - n_classes)))
    b1p = b1 if Cp == n_classes else jnp.pad(b1, ((0, 0), (0, Cp - n_classes)))

    # BlockSpecs: x / outputs tiled over the batch grid axis; weights & biases
    # are full, constant-index blocks -> resident in VMEM across iterations.
    x_spec = pl.BlockSpec((TB, dim_in), lambda i: (i, 0))
    w0_spec = pl.BlockSpec((dim_in, Hp), lambda i: (0, 0))
    b0_spec = pl.BlockSpec((1, Hp), lambda i: (0, 0))
    w1_spec = pl.BlockSpec((Hp, Cp), lambda i: (0, 0))
    b1_spec = pl.BlockSpec((1, Cp), lambda i: (0, 0))

    cparams = pltpu.CompilerParams(dimension_semantics=("parallel",))
    itemsize = jnp.dtype(x.dtype).itemsize

    if get_emb:
        cost = pl.CostEstimate(
            flops=2 * Bp * dim_in * Hp,
            transcendentals=0,
            bytes_accessed=itemsize * (Bp * dim_in + dim_in * Hp + Hp
                                       + Bp * Hp),
        )
        emb_p = pl.pallas_call(
            _emb_kernel,
            out_shape=jax.ShapeDtypeStruct((Bp, Hp), x.dtype),
            grid=(nb,),
            in_specs=[x_spec, w0_spec, b0_spec],
            out_specs=pl.BlockSpec((TB, Hp), lambda i: (i, 0)),
            compiler_params=cparams,
            cost_estimate=cost,
        )(xp, w0p, b0p)
        return emb_p[:B, :dim_hid]

    cost = pl.CostEstimate(
        flops=2 * Bp * (dim_in * Hp + Hp * Cp),
        transcendentals=0,
        bytes_accessed=itemsize * (Bp * dim_in + dim_in * Hp + Hp
                                   + Hp * Cp + Cp + Bp * Cp),
    )
    out_p = pl.pallas_call(
        _logits_kernel,
        out_shape=jax.ShapeDtypeStruct((Bp, Cp), x.dtype),
        grid=(nb,),
        in_specs=[x_spec, w0_spec, b0_spec, w1_spec, b1_spec],
        out_specs=pl.BlockSpec((TB, Cp), lambda i: (i, 0)),
        compiler_params=cparams,
        cost_estimate=cost,
    )(xp, w0p, b0p, w1p, b1p)
    return out_p[:B, :n_classes]


# ---------------------------------------------------------------------------
# Param init (mimics nn.Linear's default uniform scale), test harness.
# ---------------------------------------------------------------------------
def _init_params(key, dim_in, dim_hid, n_classes, dtype=jnp.float32):
    k0, k1, k2, k3 = jax.random.split(key, 4)
    lim0 = 1.0 / (dim_in ** 0.5)
    lim1 = 1.0 / (dim_hid ** 0.5)
    w0 = jax.random.uniform(k0, (dim_in, dim_hid), dtype, -lim0, lim0)
    b0 = jax.random.uniform(k1, (1, dim_hid), dtype, -lim0, lim0)
    w1 = jax.random.uniform(k2, (dim_hid, n_classes), dtype, -lim1, lim1)
    b1 = jax.random.uniform(k3, (1, n_classes), dtype, -lim1, lim1)
    return w0, b0, w1, b1


if __name__ == "__main__":
    B, DIM_IN, DIM_HID, N_CLASSES = 8, 32, 64, 16

    key = jax.random.PRNGKey(0)
    kx, kp = jax.random.split(key)
    x = jax.random.normal(kx, (B, DIM_IN), jnp.float32)
    w0, b0, w1, b1 = _init_params(kp, DIM_IN, DIM_HID, N_CLASSES)

    fwd_logits = jax.jit(functools.partial(my_mlps_forward, get_emb=False))
    fwd_emb = jax.jit(functools.partial(my_mlps_forward, get_emb=True))

    logits = fwd_logits(x, w0, b0, w1, b1)
    emb = fwd_emb(x, w0, b0, w1, b1)
    jax.block_until_ready((logits, emb))

    # Pure-JAX reference check.
    emb_ref = jnp.maximum(x @ w0 + b0, 0.0)
    logits_ref = emb_ref @ w1 + b1
    assert emb.shape == (B, DIM_HID) and logits.shape == (B, N_CLASSES)
    assert jnp.allclose(emb, emb_ref, atol=1e-5, rtol=1e-5)
    assert jnp.allclose(logits, logits_ref, atol=1e-5, rtol=1e-5)

    print("KERNEL_OK")
</pallas_src>

<mosaic_0001>
module attributes {stable_mosaic.version = 11 : i64} {
  func.func @_logits_kernel(%arg0: i32, %arg1: memref<8x32xf32, #tpu.memory_space<vmem>>, %arg2: memref<32x128xf32, #tpu.memory_space<vmem>>, %arg3: memref<1x128xf32, #tpu.memory_space<vmem>>, %arg4: memref<128x128xf32, #tpu.memory_space<vmem>>, %arg5: memref<1x128xf32, #tpu.memory_space<vmem>>, %arg6: memref<8x128xf32, #tpu.memory_space<vmem>>) attributes {dimension_semantics = [#tpu.dimension_semantics<parallel>], iteration_bounds = array<i64: 1>, scalar_prefetch = 0 : i64, scratch_operands = 0 : i64, tpu.core_type = #tpu.core_type<tc>, window_params = [{transform_indices = @transform_0, window_bounds = array<i64: 8, 32>}, {pipeline_mode = #tpu.pipeline_mode<synchronous>, transform_indices = @transform_1, window_bounds = array<i64: 32, 128>}, {pipeline_mode = #tpu.pipeline_mode<synchronous>, transform_indices = @transform_2, window_bounds = array<i64: 1, 128>}, {pipeline_mode = #tpu.pipeline_mode<synchronous>, transform_indices = @transform_3, window_bounds = array<i64: 128, 128>}, {pipeline_mode = #tpu.pipeline_mode<synchronous>, transform_indices = @transform_4, window_bounds = array<i64: 1, 128>}, {transform_indices = @transform_5, window_bounds = array<i64: 8, 128>}]} {
    %c0 = arith.constant 0 : index
    %c0_0 = arith.constant 0 : index
    %0 = vector.load %arg1[%c0, %c0_0] : memref<8x32xf32, #tpu.memory_space<vmem>>, vector<8x32xf32>
    %c0_1 = arith.constant 0 : index
    %c0_2 = arith.constant 0 : index
    %1 = vector.load %arg2[%c0_1, %c0_2] : memref<32x128xf32, #tpu.memory_space<vmem>>, vector<32x128xf32>
    %cst = arith.constant dense<0.000000e+00> : vector<8x128xf32>
    %2 = tpu.matmul %0, %1, %cst {dimension_numbers = #tpu.dot_dimension_numbers<[1], [0], [0], [1], [0, 0, 1, 1], [], []>} : vector<8x32xf32>, vector<32x128xf32>, vector<8x128xf32> -> vector<8x128xf32>
    %c0_3 = arith.constant 0 : index
    %c0_4 = arith.constant 0 : index
    %3 = vector.load %arg3[%c0_3, %c0_4] : memref<1x128xf32, #tpu.memory_space<vmem>>, vector<1x128xf32>
    %4 = vector.broadcast %3 : vector<1x128xf32> to vector<8x128xf32>
    %5 = arith.addf %2, %4 : vector<8x128xf32>
    %cst_5 = arith.constant 0.000000e+00 : f32
    %6 = vector.broadcast %cst_5 : f32 to vector<8x128xf32>
    %7 = arith.maximumf %5, %6 : vector<8x128xf32>
    %c0_6 = arith.constant 0 : index
    %c0_7 = arith.constant 0 : index
    %8 = vector.load %arg4[%c0_6, %c0_7] : memref<128x128xf32, #tpu.memory_space<vmem>>, vector<128x128xf32>
    %cst_8 = arith.constant dense<0.000000e+00> : vector<8x128xf32>
    %9 = tpu.matmul %7, %8, %cst_8 {dimension_numbers = #tpu.dot_dimension_numbers<[1], [0], [0], [1], [0, 0, 1, 1], [], []>} : vector<8x128xf32>, vector<128x128xf32>, vector<8x128xf32> -> vector<8x128xf32>
    %c0_9 = arith.constant 0 : index
    %c0_10 = arith.constant 0 : index
    %10 = vector.load %arg5[%c0_9, %c0_10] : memref<1x128xf32, #tpu.memory_space<vmem>>, vector<1x128xf32>
    %11 = vector.broadcast %10 : vector<1x128xf32> to vector<8x128xf32>
    %12 = arith.addf %9, %11 : vector<8x128xf32>
    %c0_11 = arith.constant 0 : index
    %c0_12 = arith.constant 0 : index
    %13 = vector.load %arg6[%c0_11, %c0_12] : memref<8x128xf32, #tpu.memory_space<vmem>>, vector<8x128xf32>
    tpu.vector_store %arg6[%c0_11, %c0_12], %12 {strides = array<i32>} : memref<8x128xf32, #tpu.memory_space<vmem>>, vector<8x128xf32>,
    return
  }
  func.func @transform_0(%arg0: i32) -> (i32, i32) {
    %c0_i32 = arith.constant 0 : i32
    %c0_i32_0 = arith.constant 0 : i32
    return %arg0, %c0_i32 : i32, i32
  }
  func.func @transform_1(%arg0: i32) -> (i32, i32) {
    %c0_i32 = arith.constant 0 : i32
    %c0_i32_0 = arith.constant 0 : i32
    %c0_i32_1 = arith.constant 0 : i32
    return %c0_i32, %c0_i32_0 : i32, i32
  }
  func.func @transform_2(%arg0: i32) -> (i32, i32) {
    %c0_i32 = arith.constant 0 : i32
    %c0_i32_0 = arith.constant 0 : i32
    %c0_i32_1 = arith.constant 0 : i32
    return %c0_i32, %c0_i32_0 : i32, i32
  }
  func.func @transform_3(%arg0: i32) -> (i32, i32) {
    %c0_i32 = arith.constant 0 : i32
    %c0_i32_0 = arith.constant 0 : i32
    %c0_i32_1 = arith.constant 0 : i32
    return %c0_i32, %c0_i32_0 : i32, i32
  }
  func.func @transform_4(%arg0: i32) -> (i32, i32) {
    %c0_i32 = arith.constant 0 : i32
    %c0_i32_0 = arith.constant 0 : i32
    %c0_i32_1 = arith.constant 0 : i32
    return %c0_i32, %c0_i32_0 : i32, i32
  }
  func.func @transform_5(%arg0: i32) -> (i32, i32) {
    %c0_i32 = arith.constant 0 : i32
    %c0_i32_0 = arith.constant 0 : i32
    return %arg0, %c0_i32 : i32, i32
  }
}

</mosaic_0001>

<bundles_post_ra>
// kernel: my_mlps_forward.1
= control target key start
LH: loop header
LB: loop body
LE: loop exit
PB: predicated region body
PF: predicated region fallthrough
CT: control target
= control target key end

     0   :  { %v345_v3 = vmov 0.0|0.0   ;;  %vm346_vm0 = vmmov 0   ;;  %v347_v6 = vmov 0.0   ;;  %s460_s0 = inlined_call_operand.vmem [shape: f32[8,32], index: 0, kind: input, shape index: {}]   ;;  %s461_s1 = inlined_call_operand.vmem [shape: f32[32,128], index: 1, kind: input, shape index: {}]   ;;  %s462_s2 = inlined_call_operand.vmem [shape: f32[1,128], index: 2, kind: input, shape index: {}]   ;;  %s463_s3 = inlined_call_operand.vmem [shape: f32[128,128], index: 3, kind: input, shape index: {}]   ;;  %s464_s4 = inlined_call_operand.vmem [shape: f32[1,128], index: 4, kind: input, shape index: {}]   ;;  %s465_s5 = inlined_call_operand.hbm [shape: f32[8,128], index: 5, kind: output, shape index: {}]  }
   0x1   :  { %v22_v0 = vld [vmem:[%s461_s1] sm:$0xff]  ;;  %v23_v1 = vld [vmem:[%s461_s1 + $0x8] sm:$0xff]  ;;  %v24_v2 = vld [vmem:[%s461_s1 + $0x10] sm:$0xff]  ;;  %287 = vmatprep.subr.bf16.mxu0 %v345_v3  ;;  %249 = vmatprep.mubr.msk.f32.mxu0 %vm346_vm0, %v347_v6 }
   0x2   :  { %v288_v4 = vpack.c.bf16 %v23_v1, %v22_v0  ;;  %v25_v5 = vld [vmem:[%s461_s1 + $0x18] sm:$0xff]  ;;  %v108_v7 = vld [vmem:[%s463_s3] sm:$0xff]  ;;  %293 = vmatprep.subr.bf16.mxu1 %v345_v3  ;;  %v109_v8 = vld [vmem:[%s463_s3 + $0x8] sm:$0xff]  ;;  %284 = vmatprep.mubr.msk.f32.mxu1 %vm346_vm0, %v347_v6 }
   0x3   :  { %v110_v9 = vld [vmem:[%s463_s3 + $0x10] sm:$0xff]  ;;  %v111_v10 = vld [vmem:[%s463_s3 + $0x18] sm:$0xff]  ;;  %v291_v11 = vpack.c.bf16 %v25_v5, %v24_v2  ;;  %v294_v12 = vpack.c.bf16 %v109_v8, %v108_v7  ;;  %v112_v14 = vld [vmem:[%s463_s3 + $0x20] sm:$0xff] }
   0x4   :  { %289 = vmatpush3.bf16.msra.mxu0 %v288_v4  ;;  %v297_v13 = vpack.c.bf16 %v111_v10, %v110_v9  ;;  %v113_v15 = vld [vmem:[%s463_s3 + $0x28] sm:$0xff] }
   0x5   :  { %290 = vmatprep.subr.bf16.mxu0 %v345_v3  ;;  %295 = vmatpush3.bf16.msra.mxu1 %v294_v12 }
   0x6   :  { %296 = vmatprep.subr.bf16.mxu1 %v345_v3 }
   0x7   :  { %10 = vsyncpa [#allocation3], 0  ;;  %v21_v16 = vld [vmem:[%s460_s0] sm:$0xff]  ;;  %vm33_vm1 = vcmask 261120   ;;  %v300_v17 = vpack.c.bf16 %v113_v15, %v112_v14  ;;  %v114_v18 = vld [vmem:[%s463_s3 + $0x30] sm:$0xff]  ;;  %s348_s11 = smov [#allocation2]  }
   0x8   :  { %292 = vmatpush3.bf16.msra.mxu0 %v291_v11  ;;  %v115_v19 = vld [vmem:[%s463_s3 + $0x38] sm:$0xff]  ;;  %v116_v21 = vld [vmem:[%s463_s3 + $0x40] sm:$0xff]  ;;  %v117_v22 = vld [vmem:[%s463_s3 + $0x48] sm:$0xff]  ;;  %s208_s12 = sshll.u32 %s348_s11, 4  ;;  %s209_s12 = int_to_ptr.vmem [resolvable:$true] %s208_s12 }
   0x9   :  { %298 = vmatpush3.bf16.msra.mxu1 %v297_v13  ;;  %v303_v20 = vpack.c.bf16 %v115_v19, %v114_v18  ;;  %v306_v23 = vpack.c.bf16 %v117_v22, %v116_v21  ;;  %v118_v24 = vld [vmem:[%s463_s3 + $0x50] sm:$0xff]  ;;  %v119_v25 = vld [vmem:[%s463_s3 + $0x58] sm:$0xff]  ;;  %v120_v27 = vld [vmem:[%s463_s3 + $0x60] sm:$0xff]  ;;  %p326_p1 = scmp.lt.s32.totalorder %s209_s12, %s209_s12 }
   0xa   :  { %299 = vmatprep.subr.bf16.mxu1 %v345_v3  ;;  %v309_v26 = vpack.c.bf16 %v119_v25, %v118_v24  ;;  %v121_v28 = vld [vmem:[%s463_s3 + $0x68] sm:$0xff]  ;;  %v122_v30 = vld [vmem:[%s463_s3 + $0x70] sm:$0xff]  ;;  %v123_v31 = vld [vmem:[%s463_s3 + $0x78] sm:$0xff]  ;;  %s321_s3 = scalar_lea.vmem %s209_s12, 128 }
   0xb   :  { %250 = vmatmul.mubr.msk.f32.vlgmr.msra.gmra.mrb[0].mxu0 %vm33_vm1, %v21_v16  ;;  %v312_v29 = vpack.c.bf16 %v121_v28, %v120_v27  ;;  %v315_v32 = vpack.c.bf16 %v123_v31, %v122_v30  ;;  %v216_v33 = vld [vmem:[%s462_s2] ss:$0 sm:$0xff]  ;;  %p322_p0 = scmp.ne.s32.totalorder %s209_s12, %s321_s3  ;;  %p327_p2 = scmp.lt.s32.totalorder %s321_s3, %s321_s3 }
   0xc   :  { %v218_v38 = vld [vmem:[%s464_s4] ss:$0 sm:$0xff] }
   0xd   :  { %301 = vmatpush3.bf16.msra.mxu1 %v300_v17  ;;  %p328_p3 = por %p327_p2, %p326_p1 }
   0xe   :  { %302 = vmatprep.subr.bf16.mxu1 %v345_v3 }
   0xf   :  { %p329_p4 = pnand %p328_p3, %p322_p0 }
  0x11   :  { %304 = vmatpush3.bf16.msra.mxu1 %v303_v20 }
  0x12   :  { %305 = vmatprep.subr.bf16.mxu1 %v345_v3 }
  0x15   :  { %307 = vmatpush3.bf16.msra.mxu1 %v306_v23 }
  0x16   :  { %308 = vmatprep.subr.bf16.mxu1 %v345_v3 }
  0x19   :  { %310 = vmatpush3.bf16.msra.mxu1 %v309_v26 }
  0x1a   :  { %311 = vmatprep.subr.bf16.mxu1 %v345_v3 }
  0x1d   :  { %313 = vmatpush3.bf16.msra.mxu1 %v312_v29 }
  0x1e   :  { %314 = vmatprep.subr.bf16.mxu1 %v345_v3 }
  0x21   :  { %316 = vmatpush3.bf16.msra.mxu1 %v315_v32 }
  0xde   :  { %v103_v34 = vpop.f32.mrb[0].mxu0 }
  0xdf   :  { %v104_v35 = vadd.f32 %v216_v33, %v103_v34  ;;  %v251_v36 = vpop.f32.mrb[1].mxu0 }
  0xe1   :  { %v107_v37 = vmax.f32 %v104_v35, 0.0 }
  0xe3   :  { %285 = vmatmul.mubr.f32.vlgmr.msra.gmra.mrb[0].mxu1 %v107_v37 }
 0x1b6   :  { %v197_v39 = vpop.f32.mrb[0].mxu1 }
 0x1b7   :  { %v198_v40 = vadd.f32 %v218_v38, %v197_v39  ;;  %v286_v41 = vpop.f32.mrb[1].mxu1 }
 0x1b9   :  { %201 = vst [vmem:[#allocation2] sm:$0xff] %v198_v40 }
 0x1ba   :  { %332 = shalt.err (!%p329_p4)
}
 0x1bb   :  { %s333_s14 = scalar_lea.hbm %s465_s5, 128 }
 0x1bc   :  { %p334_p5 = scmp.ne.s32.totalorder %s465_s5, %s333_s14  ;;  %p337_p6 = scmp.lt.u32.totalorder %s333_s14, %s465_s5 }
 0x1be   :  { %p339_p7 = pnand %p337_p6, %p334_p5 }
 0x1c0   :  { %342 = shalt.err (!%p339_p7)
}
 0x1c1   :  { %211 = dma.vmem_to_hbm [thread:$0]  %s209_s12, 128, %s465_s5, [#allocation3]  }
 0x1c2   :  { %343 = dma.done.wait [#allocation3], 128  }
 0x1c3   :  { %344 = vsyncadd [#allocation3], 4294967168 }
 0x1c4   :  { %215 = vsyncpa [#allocation3], 1 }

</bundles_post_ra>
